<compile_context>
chip_gen: v6e
topology: v6e:2x2x1
jax: 0.10.0
libtpu: 0.0.40
codegen_flags: <defaults>
</compile_context>

<pallas_src>
import math

import numpy as np
import jax
import jax.numpy as jnp
from jax import lax
from jax.experimental import pallas as pl
from jax.experimental.pallas import tpu as pltpu

POLICY_OUTPUT_SIZE = 64
H = W = 8
C_IN = 2
C_MID = 16
FLAT = C_MID * H * W            # 16 * 8 * 8 = 1024
BATCH_PAD = 8                   # pad batch rows to one f32 sublane tile
FC1_PAD = 128                   # fc1 output 120 -> 128 lanes
FC2_PAD = 128                   # fc2 output 84  -> 128 lanes
HEAD_PAD = 128                  # 64 policy | 1 value | 63 zero pad

_VMEM = pl.BlockSpec(memory_space=pltpu.MemorySpace.VMEM)


# ---------------------------------------------------------------- kernel ----
def _fused_forward_kernel(x_ref, m1_ref, bc1_ref, m2_ref, bc2_ref,
                          w1_ref, b1_ref, w2_ref, b2_ref, wh_ref, bh_ref,
                          out_ref):
    """Entire forward pass; all operands VMEM-resident, single invocation."""
    cdt = m1_ref.dtype          # matmul dtype (bf16 by default); f32 accumulate
    f32 = jnp.float32

    def band_conv(h_pad, cw, m_ref, b_ref):
        """3x3 'same' conv as ONE MXU matmul.

        h_pad: (8, (H+2)*cw) f32 activations in per-row band layout
        (column = (y+1)*cw + c*W + x) with zero y-halo blocks at both ends.
        The 8 three-row slabs are stacked along sublanes and contracted
        against the shared (3*cw, C_MID*W) band weight block.  Returns the 8
        per-y output blocks, each (8, 128), bias + ReLU applied.
        """
        lhs = jnp.concatenate(
            [h_pad[:, y * cw:(y + 3) * cw] for y in range(H)], axis=0)  # (64, 3*cw)
        o = jnp.dot(lhs.astype(cdt), m_ref[...], preferred_element_type=f32)
        o = jnp.maximum(o + b_ref[...], 0.0)                            # (64, 128)
        return [o[y * BATCH_PAD:(y + 1) * BATCH_PAD, :] for y in range(H)]

    zero_blk = jnp.zeros((BATCH_PAD, C_MID * W), f32)                   # (8, 128)

    # conv1 + relu, conv2 + relu (each a single matmul on the MXU)
    h1_blocks = band_conv(x_ref[...], C_IN * W, m1_ref, bc1_ref)
    h1_pad = jnp.concatenate([zero_blk] + h1_blocks + [zero_blk], axis=1)   # (8,1280)
    h2_blocks = band_conv(h1_pad, C_MID * W, m2_ref, bc2_ref)
    h2 = jnp.concatenate(h2_blocks, axis=1)                                 # (8,1024)

    def dense(h, w_ref, b_ref):
        return jnp.dot(h.astype(cdt), w_ref[...],
                       preferred_element_type=f32) + b_ref[...]

    h = jnp.maximum(dense(h2, w1_ref, b1_ref), 0.0)   # fc1 -> (8,128), 120 real
    h = jnp.maximum(dense(h, w2_ref, b2_ref), 0.0)    # fc2 -> (8,128),  84 real
    z = dense(h, wh_ref, bh_ref)                      # fused heads -> (8,128)

    # policy head: softmax over the 64 policy lanes (exact reciprocal)
    logits = z[:, :POLICY_OUTPUT_SIZE]
    m = jnp.max(logits, axis=-1, keepdims=True)
    e = jnp.exp(logits - m)
    probs = e / jnp.sum(e, axis=-1, keepdims=True)
    # value head: tanh (lane 64)
    val = jnp.tanh(z[:, POLICY_OUTPUT_SIZE:POLICY_OUTPUT_SIZE + 1])

    # single lane-dense (8,128) store: [ policy probs | broadcast value ]
    out_ref[...] = jnp.concatenate(
        [probs, jnp.broadcast_to(val, (BATCH_PAD, POLICY_OUTPUT_SIZE))], axis=1)


# --------------------------------------------------------------- wrapper ----
def dummy_network_forward(x_nchw, fused):
    B = x_nchw.shape[0]
    xp = jnp.pad(x_nchw.astype(jnp.float32),
                 ((0, BATCH_PAD - B), (0, 0), (0, 0), (0, 0)))
    # per-row band layout: column = y*(C_IN*W) + c*W + x, plus one zero y-halo
    # block (C_IN*W columns) at each end -> (8, (H+2)*C_IN*W) = (8, 160)
    xr = jnp.transpose(xp, (0, 2, 1, 3)).reshape(BATCH_PAD, H * C_IN * W)
    xr = jnp.pad(xr, ((0, 0), (C_IN * W, C_IN * W)))

    out = pl.pallas_call(
        _fused_forward_kernel,
        out_shape=jax.ShapeDtypeStruct((BATCH_PAD, HEAD_PAD), jnp.float32),
        in_specs=[_VMEM] * 11,
        out_specs=_VMEM,
    )(xr,
      fused['m1'], fused['bc1'], fused['m2'], fused['bc2'],
      fused['w_fc1'], fused['b_fc1'], fused['w_fc2'], fused['b_fc2'],
      fused['w_head'], fused['b_head'])
    return out[:B, :POLICY_OUTPUT_SIZE], out[:B, POLICY_OUTPUT_SIZE]


# -------------------------------------------------- one-time weight prep ----
def _conv3x3_band_matrix(w_oihw):
    """Expand a (Cout, Cin, 3, 3) 'same' conv into the shared band weight
    block M of shape (3*Cin*W, Cout*W) used by band_conv:
        out_block_y = slab_y @ M,   slab_y[b, dy*Cin*W + ci*W + xi]
                                     = in_padded[b, ci, y+dy-1, xi].
    x-direction zero padding is realized by absent (zero) entries in M."""
    w = np.asarray(w_oihw, np.float32)
    cout, cin = w.shape[0], w.shape[1]
    m = np.zeros((3 * cin * W, cout * W), np.float32)
    for dy in range(3):                     # input row = y + dy - 1
        for ci in range(cin):
            for xi in range(W):             # input x (no x padding in slab)
                j = dy * cin * W + ci * W + xi
                for co in range(cout):
                    for xo in range(W):
                        kx = xi - xo + 1
                        if 0 <= kx <= 2:
                            m[j, co * W + xo] = w[co, ci, dy, kx]
    return m


def prepare_fused_params(params, compute_dtype=jnp.bfloat16):
    """Offline weight prep (host-side, one-time):
       band-blocked conv weight blocks, spatially broadcast conv biases,
       fc1 rows permuted from NCHW-flatten order to the band (y,c,x) order,
       fc1/fc2 outputs zero-padded to 128 lanes, policy+value heads fused into
       one (128,128) block, matmul weights cast to compute_dtype (bf16 default:
       MXU-native on v5e/v6e/v7x), biases kept f32 (epilogues stay f32)."""
    cdt = compute_dtype
    f32 = np.float32

    m1 = _conv3x3_band_matrix(params['conv1_w'])                   # (48, 128)
    m2 = _conv3x3_band_matrix(params['conv2_w'])                   # (384, 128)
    bc1 = np.repeat(np.asarray(params['conv1_b'], f32), W)[None, :]   # (1, 128)
    bc2 = np.repeat(np.asarray(params['conv2_b'], f32), W)[None, :]   # (1, 128)

    # fc1: permute rows NCHW (c, y, x) -> band (y, c, x); pad 120 -> 128 cols.
    src = np.arange(FLAT).reshape(C_MID, H, W)           # src[c,y,x] = NCHW idx
    perm = np.transpose(src, (1, 0, 2)).reshape(FLAT)    # band idx -> NCHW idx
    w_fc1 = np.asarray(params['fc1_w'], f32)[perm]
    w_fc1 = np.pad(w_fc1, ((0, 0), (0, FC1_PAD - 120)))
    b_fc1 = np.pad(np.asarray(params['fc1_b'], f32), (0, FC1_PAD - 120))[None, :]

    w_fc2 = np.pad(np.asarray(params['fc2_w'], f32),
                   ((0, FC1_PAD - 120), (0, FC2_PAD - 84)))
    b_fc2 = np.pad(np.asarray(params['fc2_b'], f32), (0, FC2_PAD - 84))[None, :]

    # fused policy | value head, zero-padded to a lane-dense 128-wide output.
    w_h = np.zeros((FC2_PAD, HEAD_PAD), f32)
    w_h[:84, :POLICY_OUTPUT_SIZE] = np.asarray(params['policy_w'], f32)
    w_h[:84, POLICY_OUTPUT_SIZE] = np.asarray(params['value_w'], f32)[:, 0]
    b_h = np.zeros((1, HEAD_PAD), f32)
    b_h[0, :POLICY_OUTPUT_SIZE] = np.asarray(params['policy_b'], f32)
    b_h[0, POLICY_OUTPUT_SIZE] = np.asarray(params['value_b'], f32)[0]

    return {
        'm1': jnp.asarray(m1, cdt), 'bc1': jnp.asarray(bc1, jnp.float32),
        'm2': jnp.asarray(m2, cdt), 'bc2': jnp.asarray(bc2, jnp.float32),
        'w_fc1': jnp.asarray(w_fc1, cdt), 'b_fc1': jnp.asarray(b_fc1, jnp.float32),
        'w_fc2': jnp.asarray(w_fc2, cdt), 'b_fc2': jnp.asarray(b_fc2, jnp.float32),
        'w_head': jnp.asarray(w_h, cdt), 'b_head': jnp.asarray(b_h, jnp.float32),
    }


# ---------------------------------------------------------------- params ----
def _uniform(key, shape, bound):
    return jax.random.uniform(key, shape, jnp.float32, -bound, bound)


def init_params(key):
    ks = jax.random.split(key, 12)

    def conv_init(kw, kb, cin, cout):
        bound = 1.0 / math.sqrt(cin * 9)
        return (_uniform(kw, (cout, cin, 3, 3), bound),        # OIHW
                _uniform(kb, (cout,), bound))

    def lin_init(kw, kb, fin, fout):
        bound = 1.0 / math.sqrt(fin)
        return _uniform(kw, (fin, fout), bound), _uniform(kb, (fout,), bound)

    p = {}
    p['conv1_w'], p['conv1_b'] = conv_init(ks[0], ks[1], C_IN, C_MID)
    p['conv2_w'], p['conv2_b'] = conv_init(ks[2], ks[3], C_MID, C_MID)
    p['fc1_w'], p['fc1_b'] = lin_init(ks[4], ks[5], FLAT, 120)
    p['fc2_w'], p['fc2_b'] = lin_init(ks[6], ks[7], 120, 84)
    p['policy_w'], p['policy_b'] = lin_init(ks[8], ks[9], 84, POLICY_OUTPUT_SIZE)
    p['value_w'], p['value_b'] = lin_init(ks[10], ks[11], 84, 1)
    return p


# ------------------------------------------------------------- reference ----
def reference_forward(x_nchw, params):
    def conv(x, w, b):
        y = lax.conv_general_dilated(x, w, (1, 1), ((1, 1), (1, 1)),
                                     dimension_numbers=('NCHW', 'OIHW', 'NCHW'))
        return jax.nn.relu(y + b.reshape(1, -1, 1, 1))

    x = conv(x_nchw, params['conv1_w'], params['conv1_b'])
    x = conv(x, params['conv2_w'], params['conv2_b'])
    x = x.reshape(x.shape[0], -1)                               # NCHW flatten
    x = jax.nn.relu(x @ params['fc1_w'] + params['fc1_b'])
    x = jax.nn.relu(x @ params['fc2_w'] + params['fc2_b'])
    p = jax.nn.softmax(x @ params['policy_w'] + params['policy_b'], axis=1)
    v = jnp.tanh(x @ params['value_w'] + params['value_b'])[:, 0]
    return p, v


# ----------------------------------------------------------------- main -----
if __name__ == "__main__":
    key = jax.random.PRNGKey(0)
    k_params, k_x = jax.random.split(key)
    params = init_params(k_params)
    x = jax.random.normal(k_x, (2, C_IN, H, W), jnp.float32)    # NCHW input

    p_ref, v_ref = reference_forward(x, params)

    fwd = jax.jit(dummy_network_forward)

    # float32 matmul path (tight numerical check vs pure-JAX reference).
    fused_f32 = prepare_fused_params(params, jnp.float32)
    p, v = fwd(x, fused_f32)
    jax.block_until_ready((p, v))
    assert p.shape == (2, POLICY_OUTPUT_SIZE) and v.shape == (2,)
    assert jnp.allclose(p, p_ref, atol=1e-4, rtol=1e-3)
    assert jnp.allclose(v, v_ref, atol=1e-4, rtol=1e-3)
    assert jnp.allclose(jnp.sum(p, axis=1), 1.0, atol=1e-5)

    # bfloat16 matmul path (the default; MXU-native on v5e/v6e/v7x).
    fused_bf16 = prepare_fused_params(params)
    p16, v16 = fwd(x, fused_bf16)
    jax.block_until_ready((p16, v16))
    assert jnp.allclose(p16, p_ref, atol=5e-2)
    assert jnp.allclose(v16, v_ref, atol=5e-2)

    print("KERNEL_OK")
</pallas_src>

<mosaic_0001>
module attributes {stable_mosaic.version = 11 : i64} {
  func.func @_fused_forward_kernel(%arg0: memref<8x160xf32, #tpu.memory_space<vmem>>, %arg1: memref<48x128xf32, #tpu.memory_space<vmem>>, %arg2: memref<1x128xf32, #tpu.memory_space<vmem>>, %arg3: memref<384x128xf32, #tpu.memory_space<vmem>>, %arg4: memref<1x128xf32, #tpu.memory_space<vmem>>, %arg5: memref<1024x128xf32, #tpu.memory_space<vmem>>, %arg6: memref<1x128xf32, #tpu.memory_space<vmem>>, %arg7: memref<128x128xf32, #tpu.memory_space<vmem>>, %arg8: memref<1x128xf32, #tpu.memory_space<vmem>>, %arg9: memref<128x128xf32, #tpu.memory_space<vmem>>, %arg10: memref<1x128xf32, #tpu.memory_space<vmem>>, %arg11: memref<8x128xf32, #tpu.memory_space<vmem>>) attributes {dimension_semantics = [], scalar_prefetch = 0 : i64, scratch_operands = 0 : i64, tpu.core_type = #tpu.core_type<tc>} {
    %cst = arith.constant 0.000000e+00 : f32
    %0 = vector.broadcast %cst : f32 to vector<8x128xf32>
    %c0 = arith.constant 0 : index
    %c0_0 = arith.constant 0 : index
    %1 = vector.load %arg0[%c0, %c0_0] : memref<8x160xf32, #tpu.memory_space<vmem>>, vector<8x160xf32>
    %2 = vector.extract_strided_slice %1 {offsets = [0, 0], sizes = [8, 48], strides = [1, 1]} : vector<8x160xf32> to vector<8x48xf32>
    %3 = vector.extract_strided_slice %1 {offsets = [0, 16], sizes = [8, 48], strides = [1, 1]} : vector<8x160xf32> to vector<8x48xf32>
    %4 = vector.extract_strided_slice %1 {offsets = [0, 32], sizes = [8, 48], strides = [1, 1]} : vector<8x160xf32> to vector<8x48xf32>
    %5 = vector.extract_strided_slice %1 {offsets = [0, 48], sizes = [8, 48], strides = [1, 1]} : vector<8x160xf32> to vector<8x48xf32>
    %6 = vector.extract_strided_slice %1 {offsets = [0, 64], sizes = [8, 48], strides = [1, 1]} : vector<8x160xf32> to vector<8x48xf32>
    %7 = vector.extract_strided_slice %1 {offsets = [0, 80], sizes = [8, 48], strides = [1, 1]} : vector<8x160xf32> to vector<8x48xf32>
    %8 = vector.extract_strided_slice %1 {offsets = [0, 96], sizes = [8, 48], strides = [1, 1]} : vector<8x160xf32> to vector<8x48xf32>
    %9 = vector.extract_strided_slice %1 {offsets = [0, 112], sizes = [8, 48], strides = [1, 1]} : vector<8x160xf32> to vector<8x48xf32>
    %10 = tpu.concatenate %2, %3, %4, %5, %6, %7, %8, %9 in 0 : vector<8x48xf32>, vector<8x48xf32>, vector<8x48xf32>, vector<8x48xf32>, vector<8x48xf32>, vector<8x48xf32>, vector<8x48xf32>, vector<8x48xf32> -> vector<64x48xf32>
    %c0_1 = arith.constant 0 : index
    %c0_2 = arith.constant 0 : index
    %11 = vector.load %arg1[%c0_1, %c0_2] : memref<48x128xf32, #tpu.memory_space<vmem>>, vector<48x128xf32>
    %cst_3 = arith.constant dense<0.000000e+00> : vector<64x128xf32>
    %12 = tpu.matmul %10, %11, %cst_3 {dimension_numbers = #tpu.dot_dimension_numbers<[1], [0], [0], [1], [0, 0, 1, 1], [], []>} : vector<64x48xf32>, vector<48x128xf32>, vector<64x128xf32> -> vector<64x128xf32>
    %c0_4 = arith.constant 0 : index
    %c0_5 = arith.constant 0 : index
    %13 = vector.load %arg2[%c0_4, %c0_5] : memref<1x128xf32, #tpu.memory_space<vmem>>, vector<1x128xf32>
    %14 = vector.broadcast %13 : vector<1x128xf32> to vector<64x128xf32>
    %15 = arith.addf %12, %14 : vector<64x128xf32>
    %cst_6 = arith.constant 0.000000e+00 : f32
    %16 = vector.broadcast %cst_6 : f32 to vector<64x128xf32>
    %17 = arith.maximumf %15, %16 : vector<64x128xf32>
    %18 = vector.extract_strided_slice %17 {offsets = [0, 0], sizes = [8, 128], strides = [1, 1]} : vector<64x128xf32> to vector<8x128xf32>
    %19 = vector.extract_strided_slice %17 {offsets = [8, 0], sizes = [8, 128], strides = [1, 1]} : vector<64x128xf32> to vector<8x128xf32>
    %20 = vector.extract_strided_slice %17 {offsets = [16, 0], sizes = [8, 128], strides = [1, 1]} : vector<64x128xf32> to vector<8x128xf32>
    %21 = vector.extract_strided_slice %17 {offsets = [24, 0], sizes = [8, 128], strides = [1, 1]} : vector<64x128xf32> to vector<8x128xf32>
    %22 = vector.extract_strided_slice %17 {offsets = [32, 0], sizes = [8, 128], strides = [1, 1]} : vector<64x128xf32> to vector<8x128xf32>
    %23 = vector.extract_strided_slice %17 {offsets = [40, 0], sizes = [8, 128], strides = [1, 1]} : vector<64x128xf32> to vector<8x128xf32>
    %24 = vector.extract_strided_slice %17 {offsets = [48, 0], sizes = [8, 128], strides = [1, 1]} : vector<64x128xf32> to vector<8x128xf32>
    %25 = vector.extract_strided_slice %17 {offsets = [56, 0], sizes = [8, 128], strides = [1, 1]} : vector<64x128xf32> to vector<8x128xf32>
    %26 = tpu.concatenate %0, %18, %19, %20, %21, %22, %23, %24, %25, %0 in 1 : vector<8x128xf32>, vector<8x128xf32>, vector<8x128xf32>, vector<8x128xf32>, vector<8x128xf32>, vector<8x128xf32>, vector<8x128xf32>, vector<8x128xf32>, vector<8x128xf32>, vector<8x128xf32> -> vector<8x1280xf32>
    %27 = vector.extract_strided_slice %26 {offsets = [0, 0], sizes = [8, 384], strides = [1, 1]} : vector<8x1280xf32> to vector<8x384xf32>
    %28 = vector.extract_strided_slice %26 {offsets = [0, 128], sizes = [8, 384], strides = [1, 1]} : vector<8x1280xf32> to vector<8x384xf32>
    %29 = vector.extract_strided_slice %26 {offsets = [0, 256], sizes = [8, 384], strides = [1, 1]} : vector<8x1280xf32> to vector<8x384xf32>
    %30 = vector.extract_strided_slice %26 {offsets = [0, 384], sizes = [8, 384], strides = [1, 1]} : vector<8x1280xf32> to vector<8x384xf32>
    %31 = vector.extract_strided_slice %26 {offsets = [0, 512], sizes = [8, 384], strides = [1, 1]} : vector<8x1280xf32> to vector<8x384xf32>
    %32 = vector.extract_strided_slice %26 {offsets = [0, 640], sizes = [8, 384], strides = [1, 1]} : vector<8x1280xf32> to vector<8x384xf32>
    %33 = vector.extract_strided_slice %26 {offsets = [0, 768], sizes = [8, 384], strides = [1, 1]} : vector<8x1280xf32> to vector<8x384xf32>
    %34 = vector.extract_strided_slice %26 {offsets = [0, 896], sizes = [8, 384], strides = [1, 1]} : vector<8x1280xf32> to vector<8x384xf32>
    %35 = tpu.concatenate %27, %28, %29, %30, %31, %32, %33, %34 in 0 : vector<8x384xf32>, vector<8x384xf32>, vector<8x384xf32>, vector<8x384xf32>, vector<8x384xf32>, vector<8x384xf32>, vector<8x384xf32>, vector<8x384xf32> -> vector<64x384xf32>
    %c0_7 = arith.constant 0 : index
    %c0_8 = arith.constant 0 : index
    %36 = vector.load %arg3[%c0_7, %c0_8] : memref<384x128xf32, #tpu.memory_space<vmem>>, vector<384x128xf32>
    %cst_9 = arith.constant dense<0.000000e+00> : vector<64x128xf32>
    %37 = tpu.matmul %35, %36, %cst_9 {dimension_numbers = #tpu.dot_dimension_numbers<[1], [0], [0], [1], [0, 0, 1, 1], [], []>} : vector<64x384xf32>, vector<384x128xf32>, vector<64x128xf32> -> vector<64x128xf32>
    %c0_10 = arith.constant 0 : index
    %c0_11 = arith.constant 0 : index
    %38 = vector.load %arg4[%c0_10, %c0_11] : memref<1x128xf32, #tpu.memory_space<vmem>>, vector<1x128xf32>
    %39 = vector.broadcast %38 : vector<1x128xf32> to vector<64x128xf32>
    %40 = arith.addf %37, %39 : vector<64x128xf32>
    %cst_12 = arith.constant 0.000000e+00 : f32
    %41 = vector.broadcast %cst_12 : f32 to vector<64x128xf32>
    %42 = arith.maximumf %40, %41 : vector<64x128xf32>
    %43 = vector.extract_strided_slice %42 {offsets = [0, 0], sizes = [8, 128], strides = [1, 1]} : vector<64x128xf32> to vector<8x128xf32>
    %44 = vector.extract_strided_slice %42 {offsets = [8, 0], sizes = [8, 128], strides = [1, 1]} : vector<64x128xf32> to vector<8x128xf32>
    %45 = vector.extract_strided_slice %42 {offsets = [16, 0], sizes = [8, 128], strides = [1, 1]} : vector<64x128xf32> to vector<8x128xf32>
    %46 = vector.extract_strided_slice %42 {offsets = [24, 0], sizes = [8, 128], strides = [1, 1]} : vector<64x128xf32> to vector<8x128xf32>
    %47 = vector.extract_strided_slice %42 {offsets = [32, 0], sizes = [8, 128], strides = [1, 1]} : vector<64x128xf32> to vector<8x128xf32>
    %48 = vector.extract_strided_slice %42 {offsets = [40, 0], sizes = [8, 128], strides = [1, 1]} : vector<64x128xf32> to vector<8x128xf32>
    %49 = vector.extract_strided_slice %42 {offsets = [48, 0], sizes = [8, 128], strides = [1, 1]} : vector<64x128xf32> to vector<8x128xf32>
    %50 = vector.extract_strided_slice %42 {offsets = [56, 0], sizes = [8, 128], strides = [1, 1]} : vector<64x128xf32> to vector<8x128xf32>
    %51 = tpu.concatenate %43, %44, %45, %46, %47, %48, %49, %50 in 1 : vector<8x128xf32>, vector<8x128xf32>, vector<8x128xf32>, vector<8x128xf32>, vector<8x128xf32>, vector<8x128xf32>, vector<8x128xf32>, vector<8x128xf32> -> vector<8x1024xf32>
    %c0_13 = arith.constant 0 : index
    %c0_14 = arith.constant 0 : index
    %52 = vector.load %arg5[%c0_13, %c0_14] : memref<1024x128xf32, #tpu.memory_space<vmem>>, vector<1024x128xf32>
    %cst_15 = arith.constant dense<0.000000e+00> : vector<8x128xf32>
    %53 = tpu.matmul %51, %52, %cst_15 {dimension_numbers = #tpu.dot_dimension_numbers<[1], [0], [0], [1], [0, 0, 1, 1], [], []>} : vector<8x1024xf32>, vector<1024x128xf32>, vector<8x128xf32> -> vector<8x128xf32>
    %c0_16 = arith.constant 0 : index
    %c0_17 = arith.constant 0 : index
    %54 = vector.load %arg6[%c0_16, %c0_17] : memref<1x128xf32, #tpu.memory_space<vmem>>, vector<1x128xf32>
    %55 = vector.broadcast %54 : vector<1x128xf32> to vector<8x128xf32>
    %56 = arith.addf %53, %55 : vector<8x128xf32>
    %cst_18 = arith.constant 0.000000e+00 : f32
    %57 = vector.broadcast %cst_18 : f32 to vector<8x128xf32>
    %58 = arith.maximumf %56, %57 : vector<8x128xf32>
    %c0_19 = arith.constant 0 : index
    %c0_20 = arith.constant 0 : index
    %59 = vector.load %arg7[%c0_19, %c0_20] : memref<128x128xf32, #tpu.memory_space<vmem>>, vector<128x128xf32>
    %cst_21 = arith.constant dense<0.000000e+00> : vector<8x128xf32>
    %60 = tpu.matmul %58, %59, %cst_21 {dimension_numbers = #tpu.dot_dimension_numbers<[1], [0], [0], [1], [0, 0, 1, 1], [], []>} : vector<8x128xf32>, vector<128x128xf32>, vector<8x128xf32> -> vector<8x128xf32>
    %c0_22 = arith.constant 0 : index
    %c0_23 = arith.constant 0 : index
    %61 = vector.load %arg8[%c0_22, %c0_23] : memref<1x128xf32, #tpu.memory_space<vmem>>, vector<1x128xf32>
    %62 = vector.broadcast %61 : vector<1x128xf32> to vector<8x128xf32>
    %63 = arith.addf %60, %62 : vector<8x128xf32>
    %cst_24 = arith.constant 0.000000e+00 : f32
    %64 = vector.broadcast %cst_24 : f32 to vector<8x128xf32>
    %65 = arith.maximumf %63, %64 : vector<8x128xf32>
    %c0_25 = arith.constant 0 : index
    %c0_26 = arith.constant 0 : index
    %66 = vector.load %arg9[%c0_25, %c0_26] : memref<128x128xf32, #tpu.memory_space<vmem>>, vector<128x128xf32>
    %cst_27 = arith.constant dense<0.000000e+00> : vector<8x128xf32>
    %67 = tpu.matmul %65, %66, %cst_27 {dimension_numbers = #tpu.dot_dimension_numbers<[1], [0], [0], [1], [0, 0, 1, 1], [], []>} : vector<8x128xf32>, vector<128x128xf32>, vector<8x128xf32> -> vector<8x128xf32>
    %c0_28 = arith.constant 0 : index
    %c0_29 = arith.constant 0 : index
    %68 = vector.load %arg10[%c0_28, %c0_29] : memref<1x128xf32, #tpu.memory_space<vmem>>, vector<1x128xf32>
    %69 = vector.broadcast %68 : vector<1x128xf32> to vector<8x128xf32>
    %70 = arith.addf %67, %69 : vector<8x128xf32>
    %71 = vector.extract_strided_slice %70 {offsets = [0, 0], sizes = [8, 64], strides = [1, 1]} : vector<8x128xf32> to vector<8x64xf32>
    %cst_30 = arith.constant dense<0xFF800000> : vector<8xf32>
    %72 = vector.multi_reduction <maximumf>, %71, %cst_30 [1] : vector<8x64xf32> to vector<8xf32>
    %73 = vector.shape_cast %72 : vector<8xf32> to vector<8x1xf32>
    %74 = vector.broadcast %73 : vector<8x1xf32> to vector<8x64xf32>
    %75 = arith.subf %71, %74 : vector<8x64xf32>
    %76 = math.exp %75 : vector<8x64xf32>
    %cst_31 = arith.constant dense<0.000000e+00> : vector<8xf32>
    %77 = vector.multi_reduction <add>, %76, %cst_31 [1] : vector<8x64xf32> to vector<8xf32>
    %78 = vector.shape_cast %77 : vector<8xf32> to vector<8x1xf32>
    %79 = vector.broadcast %78 : vector<8x1xf32> to vector<8x64xf32>
    %80 = arith.divf %76, %79 : vector<8x64xf32>
    %81 = vector.extract_strided_slice %70 {offsets = [0, 64], sizes = [8, 1], strides = [1, 1]} : vector<8x128xf32> to vector<8x1xf32>
    %82 = math.tanh %81 : vector<8x1xf32>
    %83 = vector.shape_cast %82 : vector<8x1xf32> to vector<8x1xf32>
    %84 = vector.broadcast %83 : vector<8x1xf32> to vector<8x64xf32>
    %85 = tpu.concatenate %80, %84 in 1 : vector<8x64xf32>, vector<8x64xf32> -> vector<8x128xf32>
    %c0_32 = arith.constant 0 : index
    %c0_33 = arith.constant 0 : index
    %86 = vector.load %arg11[%c0_32, %c0_33] : memref<8x128xf32, #tpu.memory_space<vmem>>, vector<8x128xf32>
    tpu.vector_store %arg11[%c0_32, %c0_33], %85 {strides = array<i32>} : memref<8x128xf32, #tpu.memory_space<vmem>>, vector<8x128xf32>,
    return
  }
}

</mosaic_0001>

<bundles_post_ra>
// kernel: dummy_network_forward.1
= control target key start
LH: loop header
LB: loop body
LE: loop exit
PB: predicated region body
PF: predicated region fallthrough
CT: control target
= control target key end

     0   :  { %16 = vsyncpa [#allocation3], 0  ;;  %s2004_s0 = inlined_call_operand.vmem [shape: f32[8,160], index: 0, kind: input, shape index: {}]   ;;  %s2005_s1 = inlined_call_operand.vmem [shape: f32[48,128], index: 1, kind: input, shape index: {}]   ;;  %s2006_s2 = inlined_call_operand.vmem [shape: f32[1,128], index: 2, kind: input, shape index: {}]   ;;  %s2007_s3 = inlined_call_operand.vmem [shape: f32[384,128], index: 3, kind: input, shape index: {}]   ;;  %s2008_s4 = inlined_call_operand.vmem [shape: f32[1,128], index: 4, kind: input, shape index: {}]   ;;  %s2009_s5 = inlined_call_operand.hbm [shape: f32[1024,128], index: 5, kind: input, shape index: {}]   ;;  %s2010_s6 = inlined_call_operand.vmem [shape: f32[1,128], index: 6, kind: input, shape index: {}]   ;;  %s2011_s7 = inlined_call_operand.vmem [shape: f32[128,128], index: 7, kind: input, shape index: {}]   ;;  %s2012_s8 = inlined_call_operand.vmem [shape: f32[1,128], index: 8, kind: input, shape index: {}]   ;;  %s2013_s9 = inlined_call_operand.hbm [shape: f32[128,128], index: 9, kind: input, shape index: {}]   ;;  %s2014_s10 = inlined_call_operand.vmem [shape: f32[1,128], index: 10, kind: input, shape index: {}]   ;;  %s2015_s11 = inlined_call_operand.vmem [shape: f32[8,128], index: 11, kind: output, shape index: {}]  }
   0x1   :  { %17 = vsyncpa [#allocation5], 0  ;;  %s1621_s17 = smov [#allocation2]  }
   0x2   :  { %s33_s18 = sshll.u32 %s1621_s17, 4  ;;  %s34_s18 = int_to_ptr.vmem [resolvable:$true] %s33_s18 }
   0x3   :  { %s1585_s19 = scalar_lea.vmem %s34_s18, 16384  ;;  %p1590_p1 = scmp.lt.s32.totalorder %s34_s18, %s34_s18 }
   0x4   :  { %p1586_p0 = scmp.ne.s32.totalorder %s34_s18, %s1585_s19  ;;  %p1591_p2 = scmp.lt.s32.totalorder %s1585_s19, %s1585_s19 }
   0x6   :  { %p1592_p3 = por %p1591_p2, %p1590_p1 }
   0x8   :  { %p1593_p4 = pnand %p1592_p3, %p1586_p0 }
   0xa   :  { %1596 = shalt.err (!%p1593_p4)
}
   0xb   :  { %s1622_s20 = smov 128   ;;  %s1623_s21 = smov 8  }
   0xc   :  { %39 = dma.hbm_to_vmem [thread:$0]  %s2009_s5, 16384, %s34_s18, [#allocation3], %s1622_s20, %s1622_s20, %s1623_s21  }
   0xd   :  { %s1624_s24 = smov [#allocation4]  }
   0xe   :  { %s51_s25 = sshll.u32 %s1624_s24, 4  ;;  %s52_s25 = int_to_ptr.vmem [resolvable:$true] %s51_s25 }
   0xf   :  { %s1605_s26 = scalar_lea.vmem %s52_s25, 2048  ;;  %p1610_p6 = scmp.lt.s32.totalorder %s52_s25, %s52_s25 }
  0x10   :  { %p1606_p5 = scmp.ne.s32.totalorder %s52_s25, %s1605_s26  ;;  %p1611_p7 = scmp.lt.s32.totalorder %s1605_s26, %s1605_s26 }
  0x12   :  { %p1612_p8 = por %p1611_p7, %p1610_p6 }
  0x14   :  { %p1613_p9 = pnand %p1612_p8, %p1606_p5 }
  0x16   :  { %1616 = shalt.err (!%p1613_p9)
}
  0x17   :  { %57 = dma.hbm_to_vmem [thread:$0]  %s2013_s9, 2048, %s52_s25, [#allocation5], %s1622_s20, %s1622_s20, %s1623_s21  }
  0x18   :  { %1617 = dma.done.wait [#allocation3], 16384  }
  0x19   :  { %1618 = vsyncadd [#allocation3], 4294950912 }
  0x1a   :  { %1619 = dma.done.wait [#allocation5], 2048  }
  0x1b   :  { %1620 = vsyncadd [#allocation5], 4294965248  ;;  %vm105_vm0 = vcmask 392192   ;;  %v66_v0 = vld [vmem:[%s2004_s0] sm:$0xff]  ;;  %v97_v1 = vld [vmem:[%s2005_s1 + $0x28] sm:$0xff]  ;;  %s1625_s13 = smov 112  }
  0x1c   :  { %69 = vrot.lane.b32.xlu0 %v66_v0, %s1625_s13  ;;  %s1626_s14 = smov 80   ;;  %v96_v2 = vld [vmem:[%s2005_s1 + $0x20] sm:$0xff]  ;;  %1418 = vmatprep.subr.mxu0 %v97_v1  ;;  %v95_v3 = vld [vmem:[%s2005_s1 + $0x18] sm:$0xff]  ;;  %s1627_s18 = smov 96   ;;  %v265_v6 = vld [vmem:[%s2007_s3 + $0xf0] sm:$0xff]  ;;  %vm84_vm1 = vcmask 261120  }
  0x1d   :  { %73 = vrot.lane.b32.xlu1 %v66_v0, %s1626_s14  ;;  %1430 = vmatprep.mubr.msk.f32.mxu0 %vm105_vm0, %v66_v0  ;;  %s1628_s19 = smov 64   ;;  %v266_v4 = vld [vmem:[%s2007_s3 + $0xf8] sm:$0xff]  ;;  %v94_v7 = vld [vmem:[%s2005_s1 + $0x10] sm:$0xff]  ;;  %v264_v9 = vld [vmem:[%s2007_s3 + $0xe8] sm:$0xff]  ;;  %s1629_s12 = smov 48   ;;  %vm90_vm2 = vcmask 130048  }
  0x1e   :  { %1419 = vmatpush3.msra.mxu0 %v97_v1  ;;  %v250_v5 = vld [vmem:[%s2007_s3 + $0x78] sm:$0xff]  ;;  %1164 = vmatprep.subr.mxu1 %v266_v4  ;;  %v249_v8 = vld [vmem:[%s2007_s3 + $0x70] sm:$0xff]  ;;  %s1630_s13 = smov 32   ;;  %v93_v10 = vld [vmem:[%s2005_s1 + $0x8] sm:$0xff]  ;;  %vm1633_vm3 = vmmov 0   ;;  %vm1111_vm4 = vcmask 523264  }
  0x1f   :  { %1420 = vmatprep.subr.mxu0 %v96_v2  ;;  %1165 = vmatpush3.msra.mxu1 %v250_v5  ;;  %v248_v11 = vld [vmem:[%s2007_s3 + $0x68] sm:$0xff]  ;;  %v263_v13 = vld [vmem:[%s2007_s3 + $0xe0] sm:$0xff]  ;;  %v262_v16 = vld [vmem:[%s2007_s3 + $0xd8] sm:$0xff] }
  0x20   :  { %71 = vrot.lane.b32.xlu0 %v66_v0, %s1627_s18  ;;  %1421 = vmatpush3.msra.mxu0 %v96_v2  ;;  %v67_v12 = vld [vmem:[%s2004_s0 + $0x8] sm:$0xff]  ;;  %v92_v14 = vld [vmem:[%s2005_s1] sm:$0xff]  ;;  %s1631_s0 = smov 16   ;;  %v282_v17 = vld [vmem:[%s2007_s3 + $0x178] sm:$0xff] }
  0x21   :  { %75 = vrot.lane.b32.xlu1 %v66_v0, %s1628_s19  ;;  %1422 = vmatprep.subr.mxu0 %v95_v3  ;;  %v247_v15 = vld [vmem:[%s2007_s3 + $0x60] sm:$0xff]  ;;  %v246_v18 = vld [vmem:[%s2007_s3 + $0x58] sm:$0xff]  ;;  %v261_v19 = vld [vmem:[%s2007_s3 + $0xd0] sm:$0xff] }
  0x22   :  { %1423 = vmatpush3.msra.mxu0 %v95_v3  ;;  %1166 = vmatprep.subr.mxu1 %v265_v6  ;;  %v245_v20 = vld [vmem:[%s2007_s3 + $0x50] sm:$0xff]  ;;  %v260_v21 = vld [vmem:[%s2007_s3 + $0xc8] sm:$0xff]  ;;  %v259_v23 = vld [vmem:[%s2007_s3 + $0xc0] sm:$0xff] }
  0x23   :  { %1424 = vmatprep.subr.mxu0 %v94_v7  ;;  %1167 = vmatpush3.msra.mxu1 %v249_v8  ;;  %v244_v22 = vld [vmem:[%s2007_s3 + $0x48] sm:$0xff]  ;;  %v243_v24 = vld [vmem:[%s2007_s3 + $0x40] sm:$0xff]  ;;  %v258_v25 = vld [vmem:[%s2007_s3 + $0xb8] sm:$0xff] }
  0x24   :  { %77 = vrot.lane.b32.xlu0 %v66_v0, %s1629_s12  ;;  %1425 = vmatpush3.msra.mxu0 %v94_v7  ;;  %v242_v26 = vld [vmem:[%s2007_s3 + $0x38] sm:$0xff]  ;;  %v257_v27 = vld [vmem:[%s2007_s3 + $0xb0] sm:$0xff]  ;;  %v256_v29 = vld [vmem:[%s2007_s3 + $0xa8] sm:$0xff] }
  0x25   :  { %80 = vrot.lane.b32.xlu1 %v66_v0, %s1630_s13  ;;  %1168 = vmatprep.subr.mxu1 %v264_v9  ;;  %v241_v28 = vld [vmem:[%s2007_s3 + $0x30] sm:$0xff]  ;;  %v240_v30 = vld [vmem:[%s2007_s3 + $0x28] sm:$0xff]  ;;  %v255_v31 = vld [vmem:[%s2007_s3 + $0xa0] sm:$0xff] }
  0x26   :  { %1426 = vmatprep.subr.mxu0 %v93_v10  ;;  %1169 = vmatpush3.msra.mxu1 %v248_v11  ;;  %v239_v32 = vld [vmem:[%s2007_s3 + $0x20] sm:$0xff]  ;;  %v281_v35 = vld [vmem:[%s2007_s3 + $0x170] sm:$0xff]  ;;  %v280_v36 = vld [vmem:[%s2007_s3 + $0x168] sm:$0xff] }
  0x27   :  { %1427 = vmatpush3.msra.mxu0 %v93_v10  ;;  %1170 = vmatprep.subr.mxu1 %v263_v13  ;;  %v279_v39 = vld [vmem:[%s2007_s3 + $0x160] sm:$0xff]  ;;  %v278_v40 = vld [vmem:[%s2007_s3 + $0x158] sm:$0xff]  ;;  %v277_v43 = vld [vmem:[%s2007_s3 + $0x150] sm:$0xff] }
  0x28   :  { %82 = vrot.lane.b32.xlu0 %v67_v12, %s1630_s13  ;;  %1428 = vmatprep.subr.mxu0 %v92_v14  ;;  %v276_v44 = vld [vmem:[%s2007_s3 + $0x148] sm:$0xff]  ;;  %v275_v47 = vld [vmem:[%s2007_s3 + $0x140] sm:$0xff]  ;;  %v274_v49 = vld [vmem:[%s2007_s3 + $0x138] sm:$0xff] }
  0x29   :  { %86 = vrot.lane.b32.xlu1 %v66_v0, %s1631_s0  ;;  %1171 = vmatpush3.msra.mxu1 %v247_v15  ;;  %v273_v52 = vld [vmem:[%s2007_s3 + $0x130] sm:$0xff]  ;;  %v254_v53 = vld [vmem:[%s2007_s3 + $0x98] sm:$0xff]  ;;  %v272_v54 = vld [vmem:[%s2007_s3 + $0x128] sm:$0xff] }
  0x2a   :  { %1429 = vmatpush3.msra.mxu0 %v92_v14  ;;  %1172 = vmatprep.subr.mxu1 %v262_v16  ;;  %v238_v55 = vld [vmem:[%s2007_s3 + $0x18] sm:$0xff]  ;;  %v253_v56 = vld [vmem:[%s2007_s3 + $0x90] sm:$0xff]  ;;  %v271_v57 = vld [vmem:[%s2007_s3 + $0x120] sm:$0xff] }
  0x2b   :  { %1442 = vmatprep.subr.mxu0 %v282_v17  ;;  %1173 = vmatpush3.msra.mxu1 %v246_v18  ;;  %v237_v58 = vld [vmem:[%s2007_s3 + $0x10] sm:$0xff]  ;;  %v252_v59 = vld [vmem:[%s2007_s3 + $0x88] sm:$0xff]  ;;  %v270_v60 = vld [vmem:[%s2007_s3 + $0x118] sm:$0xff]  ;;  %v1632_v18 = vmov 0.0  }
  0x2c   :  { %88 = vrot.lane.b32.xlu0 %v67_v12, %s1631_s0  ;;  %1174 = vmatprep.subr.mxu1 %v261_v19  ;;  %v236_v61 = vld [vmem:[%s2007_s3 + $0x8] sm:$0xff]  ;;  %v251_v62 = vld [vmem:[%s2007_s3 + $0x80] sm:$0xff]  ;;  %v269_v63 = vld [vmem:[%s2007_s3 + $0x110] sm:$0xff] }
  0x2d   :  { %1175 = vmatpush3.msra.mxu1 %v245_v20  ;;  %v235_v0 = vld [vmem:[%s2007_s3] sm:$0xff]  ;;  %v268_v1 = vld [vmem:[%s2007_s3 + $0x108] sm:$0xff]  ;;  %v539_v3 = vld [vmem:[#allocation2 + $0xf8] sm:$0xff] }
  0x2e   :  { %1176 = vmatprep.subr.mxu1 %v260_v21  ;;  %v267_v2 = vld [vmem:[%s2007_s3 + $0x100] sm:$0xff]  ;;  %v571_v4 = vld [vmem:[#allocation2 + $0x1f8] sm:$0xff]  ;;  %v538_v16 = vld [vmem:[#allocation2 + $0xf0] sm:$0xff] }
  0x2f   :  { %1177 = vmatpush3.msra.mxu1 %v244_v22  ;;  %v1137_v5 = vld [vmem:[%s2006_s2] ss:$0 sm:$0xff]  ;;  %v523_v14 = vld [vmem:[#allocation2 + $0x78] sm:$0xff]  ;;  %v522_v19 = vld [vmem:[#allocation2 + $0x70] sm:$0xff] }
  0x30   :  { %1178 = vmatprep.subr.mxu1 %v259_v23 }
  0x31   :  { %1179 = vmatpush3.msra.mxu1 %v243_v24 }
  0x32   :  { %1180 = vmatprep.subr.mxu1 %v258_v25  ;;  %v537_v25 = vld [vmem:[#allocation2 + $0xe8] sm:$0xff] }
  0x33   :  { %1181 = vmatpush3.msra.mxu1 %v242_v26  ;;  %v555_v26 = vld [vmem:[#allocation2 + $0x178] sm:$0xff] }
  0x34   :  { %1182 = vmatprep.subr.mxu1 %v257_v27 }
  0x35   :  { %1183 = vmatpush3.msra.mxu1 %v241_v28  ;;  %v521_v28 = vld [vmem:[#allocation2 + $0x68] sm:$0xff] }
  0x36   :  { %1184 = vmatprep.subr.mxu1 %v256_v29  ;;  %v570_v29 = vld [vmem:[#allocation2 + $0x1f0] sm:$0xff] }
  0x37   :  { %1185 = vmatpush3.msra.mxu1 %v240_v30 }
  0x38   :  { %1186 = vmatprep.subr.mxu1 %v255_v31 }
  0x39   :  { %1187 = vmatpush3.msra.mxu1 %v239_v32  ;;  %v536_v32 = vld [vmem:[#allocation2 + $0xe0] sm:$0xff] }
  0x3a   :  { %1188 = vmatprep.subr.mxu1 %v254_v53  ;;  %v516_v53 = vld [vmem:[#allocation2 + $0x40] sm:$0xff] }
  0x3b   :  { %1189 = vmatpush3.msra.mxu1 %v238_v55  ;;  %v515_v55 = vld [vmem:[#allocation2 + $0x38] sm:$0xff] }
  0x3c   :  { %1190 = vmatprep.subr.mxu1 %v253_v56  ;;  %v551_v56 = vld [vmem:[#allocation2 + $0x158] sm:$0xff] }
  0x3d   :  { %1191 = vmatpush3.msra.mxu1 %v237_v58  ;;  %v566_v58 = vld [vmem:[#allocation2 + $0x1d0] sm:$0xff] }
  0x3e   :  { %1192 = vmatprep.subr.mxu1 %v252_v59  ;;  %v514_v59 = vld [vmem:[#allocation2 + $0x30] sm:$0xff] }
  0x3f   :  { %1193 = vmatpush3.msra.mxu1 %v236_v61  ;;  %v529_v61 = vld [vmem:[#allocation2 + $0xa8] sm:$0xff] }
  0x40   :  { %1194 = vmatprep.subr.mxu1 %v251_v62  ;;  %v565_v62 = vld [vmem:[#allocation2 + $0x1c8] sm:$0xff] }
  0x41   :  { %1195 = vmatpush3.msra.mxu1 %v235_v0  ;;  %v549_v0 = vld [vmem:[#allocation2 + $0x148] sm:$0xff] }
  0x42   :  { %1244 = vmatprep.subr.mxu1 %v539_v3  ;;  %v512_v3 = vld [vmem:[#allocation2 + $0x20] sm:$0xff] }
  0x8e   :  { %v70_v33 = vpop.permute.xlu0 %69 }
  0x8f   :  { %v74_v34 = vpop.permute.xlu1 %73  ;;  %1431 = vmatmul.mubr.msk.f32.vlgmr.msra.gmra.mxu0 %vm105_vm0, %v70_v33  ;;  %v554_v33 = vld [vmem:[#allocation2 + $0x170] sm:$0xff] }
  0x90   :  { %1443 = vmatpush3.msra.mxu0 %v282_v17 }
  0x91   :  { %1444 = vmatprep.subr.mxu0 %v281_v35 }
  0x92   :  { %v72_v37 = vpop.permute.xlu0 %71  ;;  %1445 = vmatpush3.msra.mxu0 %v281_v35  ;;  %v569_v35 = vld [vmem:[#allocation2 + $0x1e8] sm:$0xff] }
  0x93   :  { %v76_v38 = vpop.permute.xlu1 %75  ;;  %1433 = vmatprep.mubr.msk.f32.mxu0 %vm105_vm0, %v72_v37  ;;  %1446 = vmatprep.subr.mxu0 %v280_v36  ;;  %v535_v37 = vld [vmem:[#allocation2 + $0xd8] sm:$0xff] }
  0x94   :  { %1434 = vmatmul.mubr.msk.f32.gmra.mxu0 %vm105_vm0, %v74_v34  ;;  %v520_v34 = vld [vmem:[#allocation2 + $0x60] sm:$0xff] }
  0x95   :  { %1436 = vmatprep.mubr.msk.f32.mxu0 %vm105_vm0, %v76_v38  ;;  %1447 = vmatpush3.msra.mxu0 %v280_v36 }
  0x96   :  { %v78_v41 = vpop.permute.xlu0 %77  ;;  %1448 = vmatprep.subr.mxu0 %v279_v39 }
  0x97   :  { %v81_v42 = vpop.permute.xlu1 %80  ;;  %1449 = vmatpush3.msra.mxu0 %v279_v39  ;;  %v519_v39 = vld [vmem:[#allocation2 + $0x58] sm:$0xff] }
  0x98   :  { %1437 = vmatmul.mubr.msk.f32.gmra.mxu0 %vm105_vm0, %v78_v41  ;;  %1450 = vmatprep.subr.mxu0 %v278_v40  ;;  %v534_v41 = vld [vmem:[#allocation2 + $0xd0] sm:$0xff] }
  0x99   :  { %1451 = vmatpush3.msra.mxu0 %v278_v40 }
  0x9a   :  { %v83_v45 = vpop.permute.xlu0 %82  ;;  %1452 = vmatprep.subr.mxu0 %v277_v43 }
  0x9b   :  { %v85_v46 = vsel %vm84_vm1, %v81_v42, %v83_v45  ;;  %1453 = vmatpush3.msra.mxu0 %v277_v43  ;;  %v87_v48 = vpop.permute.xlu1 %86  ;;  %v553_v42 = vld [vmem:[#allocation2 + $0x168] sm:$0xff]  ;;  %v568_v45 = vld [vmem:[#allocation2 + $0x1e0] sm:$0xff] }
  0x9c   :  { %1439 = vmatprep.mubr.msk.f32.mxu0 %vm105_vm0, %v85_v46  ;;  %1454 = vmatprep.subr.mxu0 %v276_v44 }
  0x9d   :  { %1455 = vmatpush3.msra.mxu0 %v276_v44  ;;  %v518_v44 = vld [vmem:[#allocation2 + $0x50] sm:$0xff] }
  0x9e   :  { %v89_v50 = vpop.permute.xlu0 %88  ;;  %1456 = vmatprep.subr.mxu0 %v275_v47 }
  0x9f   :  { %v91_v51 = vsel %vm90_vm2, %v87_v48, %v89_v50  ;;  %1457 = vmatpush3.msra.mxu0 %v275_v47  ;;  %v533_v48 = vld [vmem:[#allocation2 + $0xc8] sm:$0xff] }
  0xa0   :  { %1440 = vmatmul.mubr.msk.f32.gmra.mxu0 %vm105_vm0, %v91_v51  ;;  %1458 = vmatprep.subr.mxu0 %v274_v49  ;;  %v517_v50 = vld [vmem:[#allocation2 + $0x48] sm:$0xff]  ;;  %v567_v51 = vld [vmem:[#allocation2 + $0x1d8] sm:$0xff] }
  0xa1   :  { %1459 = vmatpush3.msra.mxu0 %v274_v49  ;;  %v552_v49 = vld [vmem:[#allocation2 + $0x160] sm:$0xff] }
  0xa2   :  { %1460 = vmatprep.subr.mxu0 %v273_v52 }
  0xa3   :  { %1461 = vmatpush3.msra.mxu0 %v273_v52  ;;  %v532_v52 = vld [vmem:[#allocation2 + $0xc0] sm:$0xff] }
  0xa4   :  { %1462 = vmatprep.subr.mxu0 %v272_v54 }
  0xa5   :  { %1463 = vmatpush3.msra.mxu0 %v272_v54  ;;  %v531_v54 = vld [vmem:[#allocation2 + $0xb8] sm:$0xff] }
  0xa6   :  { %1464 = vmatprep.subr.mxu0 %v271_v57 }
  0xa7   :  { %1465 = vmatpush3.msra.mxu0 %v271_v57  ;;  %v530_v57 = vld [vmem:[#allocation2 + $0xb0] sm:$0xff] }
  0xa8   :  { %1466 = vmatprep.subr.mxu0 %v270_v60 }
  0xa9   :  { %1467 = vmatpush3.msra.mxu0 %v270_v60  ;;  %v550_v60 = vld [vmem:[#allocation2 + $0x150] sm:$0xff] }
  0xaa   :  { %1468 = vmatprep.subr.mxu0 %v269_v63 }
  0xab   :  { %1469 = vmatpush3.msra.mxu0 %v269_v63  ;;  %v513_v63 = vld [vmem:[#allocation2 + $0x28] sm:$0xff] }
  0xac   :  { %1470 = vmatprep.subr.mxu0 %v268_v1 }
  0xad   :  { %1471 = vmatpush3.msra.mxu0 %v268_v1  ;;  %v528_v1 = vld [vmem:[#allocation2 + $0xa0] sm:$0xff] }
  0xae   :  { %1472 = vmatprep.subr.mxu0 %v267_v2 }
  0xaf   :  { %1473 = vmatpush3.msra.mxu0 %v267_v2  ;;  %v564_v2 = vld [vmem:[#allocation2 + $0x1c0] sm:$0xff] }
  0xb0   :  { %1279 = vmatprep.subr.mxu0 %v571_v4  ;;  %v548_v4 = vld [vmem:[#allocation2 + $0x140] sm:$0xff] }
 0x14f   :  { %v1432_v6 = vpop.f32.mrf.mxu0 }
 0x150   :  { %v194_v7 = vadd.f32 %v1432_v6, %v1137_v5  ;;  %v563_v6 = vld [vmem:[#allocation2 + $0x1b8] sm:$0xff] }
 0x151   :  { %v188_v8 = vpop.f32.mrf.mxu0 }
 0x152   :  { %v228_v9 = vmax.f32 %v194_v7, 0.0  ;;  %v189_v10 = vadd.f32 %v1137_v5, %v188_v8  ;;  %v511_v7 = vld [vmem:[#allocation2 + $0x18] sm:$0xff] }
 0x153   :  { %v547_v8 = vld [vmem:[#allocation2 + $0x138] sm:$0xff] }
 0x154   :  { %v227_v11 = vmax.f32 %v189_v10, 0.0  ;;  %v1435_v12 = vpop.f32.mrf.mxu0  ;;  %1474 = vmatprep.mubr.f32.mxu0 %v228_v9  ;;  %v562_v10 = vld [vmem:[#allocation2 + $0x1b0] sm:$0xff] }
 0x155   :  { %v204_v13 = vadd.f32 %v1435_v12, %v1137_v5  ;;  %v546_v12 = vld [vmem:[#allocation2 + $0x130] sm:$0xff] }
 0x156   :  { %v198_v15 = vpop.f32.mrf.mxu0  ;;  %354 = vmatprep.mubr.f32.mxu1 %v227_v11 }
 0x157   :  { %v199_v17 = vadd.f32 %v1137_v5, %v198_v15  ;;  %355 = vmatmul.mubr.f32.vlgmr.msra.gmra.mxu1 %v1632_v18  ;;  %v230_v20 = vmax.f32 %v204_v13, 0.0  ;;  %v525_v13 = vld [vmem:[#allocation2 + $0x88] sm:$0xff] }
 0x158   :  { %359 = vmatprep.mubr.f32.mxu1 %v228_v9  ;;  %v1438_v21 = vpop.f32.mrf.mxu0  ;;  %1245 = vmatpush3.msra.mxu1 %v523_v14  ;;  %v561_v14 = vld [vmem:[#allocation2 + $0x1a8] sm:$0xff] }
 0x159   :  { %v229_v22 = vmax.f32 %v199_v17, 0.0  ;;  %v214_v23 = vadd.f32 %v1438_v21, %v1137_v5  ;;  %1246 = vmatprep.subr.mxu1 %v538_v16  ;;  %v509_v15 = vld [vmem:[#allocation2 + $0x8] sm:$0xff]  ;;  %v524_v17 = vld [vmem:[#allocation2 + $0x80] sm:$0xff] }
 0x15a   :  { %v208_v24 = vpop.f32.mrf.mxu0  ;;  %1247 = vmatpush3.msra.mxu1 %v522_v19  ;;  %v545_v16 = vld [vmem:[#allocation2 + $0x128] sm:$0xff]  ;;  %v560_v19 = vld [vmem:[#allocation2 + $0x1a0] sm:$0xff] }
 0x15b   :  { %360 = vmatmul.mubr.f32.gmra.mxu1 %v227_v11  ;;  %1475 = vmatmul.mubr.f32.vlgmr.msra.gmra.mxu0 %v229_v22  ;;  %v209_v27 = vadd.f32 %v1137_v5, %v208_v24  ;;  %v232_v30 = vmax.f32 %v214_v23, 0.0  ;;  %v510_v11 = vld [vmem:[#allocation2 + $0x10] sm:$0xff]  ;;  %v544_v21 = vld [vmem:[#allocation2 + $0x120] sm:$0xff]  ;;  %v603_v23 = vld [vmem:[#allocation2 + $0x2f8] sm:$0xff] }
 0x15c   :  { %364 = vmatprep.mubr.f32.mxu1 %v229_v22  ;;  %1477 = vmatprep.mubr.f32.mxu0 %v230_v20  ;;  %v543_v24 = vld [vmem:[#allocation2 + $0x118] sm:$0xff] }
 0x15d   :  { %v231_v31 = vmax.f32 %v209_v27, 0.0  ;;  %1248 = vmatprep.subr.mxu1 %v537_v25  ;;  %1280 = vmatpush3.msra.mxu0 %v555_v26  ;;  %v558_v25 = vld [vmem:[#allocation2 + $0x190] sm:$0xff]  ;;  %v557_v27 = vld [vmem:[#allocation2 + $0x188] sm:$0xff] }
 0x15e   :  { %1249 = vmatpush3.msra.mxu1 %v521_v28  ;;  %1281 = vmatprep.subr.mxu0 %v570_v29  ;;  %v542_v26 = vld [vmem:[#allocation2 + $0x110] sm:$0xff]  ;;  %v541_v28 = vld [vmem:[#allocation2 + $0x108] sm:$0xff]  ;;  %v556_v29 = vld [vmem:[#allocation2 + $0x180] sm:$0xff] }
 0x15f   :  { %365 = vmatmul.mubr.f32.gmra.mxu1 %v228_v9  ;;  %1478 = vmatmul.mubr.f32.gmra.mxu0 %v231_v31  ;;  %v526_v9 = vld [vmem:[#allocation2 + $0x90] sm:$0xff] }
 0x160   :  { %369 = vmatprep.mubr.f32.mxu1 %v230_v20  ;;  %v1441_v36 = vpop.f32.mrf.mxu0  ;;  %1480 = vmatprep.mubr.f32.mxu0 %v232_v30 }
 0x161   :  { %v224_v38 = vadd.f32 %v1441_v36, %v1137_v5  ;;  %1250 = vmatprep.subr.mxu1 %v536_v32  ;;  %1282 = vmatpush3.msra.mxu0 %v554_v33 }
 0x162   :  { %v218_v40 = vpop.f32.mrf.mxu0  ;;  %1251 = vmatpush3.msra.mxu1 %v520_v34  ;;  %1283 = vmatprep.subr.mxu0 %v569_v35  ;;  %v1885_v35 = vld [vmem:[%s2008_s4] ss:$0 sm:$0xff] }
 0x163   :  { %370 = vmatmul.mubr.f32.gmra.mxu1 %v229_v22  ;;  %v219_v43 = vadd.f32 %v1137_v5, %v218_v40  ;;  %1252 = vmatprep.subr.mxu1 %v535_v37  ;;  %v234_v46 = vmax.f32 %v224_v38, 0.0  ;;  %v527_v5 = vld [vmem:[#allocation2 + $0x98] sm:$0xff] }
 0x164   :  { %374 = vmatprep.mubr.f32.mxu1 %v231_v31  ;;  %1253 = vmatpush3.msra.mxu1 %v519_v39  ;;  %v559_v22 = vld [vmem:[#allocation2 + $0x198] sm:$0xff] }
 0x165   :  { %v233_v47 = vmax.f32 %v219_v43, 0.0  ;;  %1254 = vmatprep.subr.mxu1 %v534_v41  ;;  %1284 = vmatpush3.msra.mxu0 %v553_v42 }
 0x166   :  { %1255 = vmatpush3.msra.mxu1 %v518_v44  ;;  %1285 = vmatprep.subr.mxu0 %v568_v45 }
 0x167   :  { %375 = vmatmul.mubr.f32.gmra.mxu1 %v230_v20  ;;  %1481 = vmatmul.mubr.f32.gmra.mxu0 %v233_v47  ;;  %v508_v20 = vld [vmem:[#allocation2] sm:$0xff] }
 0x168   :  { %379 = vmatprep.mubr.f32.mxu1 %v232_v30  ;;  %1483 = vmatprep.mubr.f32.mxu0 %v234_v46 }
 0x169   :  { %1256 = vmatprep.subr.mxu1 %v533_v48  ;;  %1286 = vmatpush3.msra.mxu0 %v552_v49 }
 0x16a   :  { %1257 = vmatpush3.msra.mxu1 %v517_v50  ;;  %1287 = vmatprep.subr.mxu0 %v567_v51 }
 0x16b   :  { %380 = vmatmul.mubr.f32.gmra.mxu1 %v231_v31  ;;  %1484 = vmatmul.mubr.f32.gmra.mxu0 %v1632_v18  ;;  %v635_v31 = vld [vmem:[#allocation2 + $0x3f8] sm:$0xff] }
 0x16c   :  { %384 = vmatprep.mubr.f32.mxu1 %v233_v47  ;;  %1258 = vmatprep.subr.mxu1 %v532_v52 }
 0x16d   :  { %1259 = vmatpush3.msra.mxu1 %v516_v53  ;;  %1288 = vmatpush3.msra.mxu0 %v551_v56 }
 0x16e   :  { %1260 = vmatprep.subr.mxu1 %v531_v54  ;;  %1289 = vmatprep.subr.mxu0 %v566_v58  ;;  %v587_v54 = vld [vmem:[#allocation2 + $0x278] sm:$0xff] }
 0x16f   :  { %385 = vmatmul.mubr.f32.gmra.mxu1 %v232_v30  ;;  %1290 = vmatpush3.msra.mxu0 %v550_v60  ;;  %v540_v30 = vld [vmem:[#allocation2 + $0x100] sm:$0xff] }
 0x170   :  { %389 = vmatprep.mubr.f32.mxu1 %v234_v46  ;;  %1261 = vmatpush3.msra.mxu1 %v515_v55 }
 0x171   :  { %1262 = vmatprep.subr.mxu1 %v530_v57  ;;  %1291 = vmatprep.subr.mxu0 %v565_v62  ;;  %v602_v57 = vld [vmem:[#allocation2 + $0x2f0] sm:$0xff] }
 0x172   :  { %1263 = vmatpush3.msra.mxu1 %v514_v59  ;;  %1292 = vmatpush3.msra.mxu0 %v549_v0  ;;  %v586_v59 = vld [vmem:[#allocation2 + $0x270] sm:$0xff]  ;;  %v585_v0 = vld [vmem:[#allocation2 + $0x268] sm:$0xff] }
 0x173   :  { %390 = vmatmul.mubr.f32.gmra.mxu1 %v233_v47  ;;  %1264 = vmatprep.subr.mxu1 %v529_v61  ;;  %v601_v61 = vld [vmem:[#allocation2 + $0x2e8] sm:$0xff] }
 0x174   :  { %1265 = vmatpush3.msra.mxu1 %v513_v63  ;;  %1293 = vmatprep.subr.mxu0 %v564_v2 }
 0x175   :  { %1266 = vmatprep.subr.mxu1 %v528_v1  ;;  %1294 = vmatpush3.msra.mxu0 %v548_v4  ;;  %v600_v1 = vld [vmem:[#allocation2 + $0x2e0] sm:$0xff] }
 0x176   :  { %1267 = vmatpush3.msra.mxu1 %v512_v3  ;;  %1295 = vmatprep.subr.mxu0 %v563_v6  ;;  %v584_v4 = vld [vmem:[#allocation2 + $0x260] sm:$0xff]  ;;  %v599_v6 = vld [vmem:[#allocation2 + $0x2d8] sm:$0xff] }
 0x177   :  { %1268 = vmatprep.subr.mxu1 %v527_v5  ;;  %1296 = vmatpush3.msra.mxu0 %v547_v8 }
 0x178   :  { %1269 = vmatpush3.msra.mxu1 %v511_v7  ;;  %1297 = vmatprep.subr.mxu0 %v562_v10  ;;  %v619_v10 = vld [vmem:[#allocation2 + $0x378] sm:$0xff] }
 0x179   :  { %1270 = vmatprep.subr.mxu1 %v526_v9  ;;  %1298 = vmatpush3.msra.mxu0 %v546_v12  ;;  %v583_v9 = vld [vmem:[#allocation2 + $0x258] sm:$0xff]  ;;  %v598_v12 = vld [vmem:[#allocation2 + $0x2d0] sm:$0xff] }
 0x17a   :  { %1271 = vmatpush3.msra.mxu1 %v510_v11  ;;  %1299 = vmatprep.subr.mxu0 %v561_v14 }
 0x17b   :  { %1272 = vmatprep.subr.mxu1 %v525_v13  ;;  %1300 = vmatpush3.msra.mxu0 %v545_v16  ;;  %v634_v13 = vld [vmem:[#allocation2 + $0x3f0] sm:$0xff] }
 0x17c   :  { %1273 = vmatpush3.msra.mxu1 %v509_v15  ;;  %1301 = vmatprep.subr.mxu0 %v560_v19  ;;  %v582_v15 = vld [vmem:[#allocation2 + $0x250] sm:$0xff]  ;;  %v597_v19 = vld [vmem:[#allocation2 + $0x2c8] sm:$0xff] }
 0x17d   :  { %1274 = vmatprep.subr.mxu1 %v524_v17  ;;  %1302 = vmatpush3.msra.mxu0 %v544_v21  ;;  %v618_v16 = vld [vmem:[#allocation2 + $0x370] sm:$0xff] }
 0x17e   :  { %1275 = vmatpush3.msra.mxu1 %v508_v20  ;;  %1303 = vmatprep.subr.mxu0 %v559_v22  ;;  %v633_v20 = vld [vmem:[#allocation2 + $0x3e8] sm:$0xff] }
 0x17f   :  { %1314 = vmatprep.subr.mxu1 %v603_v23  ;;  %1304 = vmatpush3.msra.mxu0 %v543_v24  ;;  %v581_v23 = vld [vmem:[#allocation2 + $0x248] sm:$0xff] }
 0x180   :  { %1305 = vmatprep.subr.mxu0 %v558_v25  ;;  %v617_v24 = vld [vmem:[#allocation2 + $0x368] sm:$0xff]  ;;  %v596_v25 = vld [vmem:[#allocation2 + $0x2c0] sm:$0xff] }
 0x181   :  { %1306 = vmatpush3.msra.mxu0 %v542_v26  ;;  %v632_v26 = vld [vmem:[#allocation2 + $0x3e0] sm:$0xff] }
 0x182   :  { %1307 = vmatprep.subr.mxu0 %v557_v27 }
 0x183   :  { %1308 = vmatpush3.msra.mxu0 %v541_v28  ;;  %v580_v28 = vld [vmem:[#allocation2 + $0x240] sm:$0xff] }
 0x184   :  { %1309 = vmatprep.subr.mxu0 %v556_v29  ;;  %v616_v29 = vld [vmem:[#allocation2 + $0x360] sm:$0xff] }
 0x185   :  { %1310 = vmatpush3.msra.mxu0 %v540_v30 }
 0x186   :  { %1349 = vmatprep.subr.mxu0 %v635_v31  ;;  %v595_v31 = vld [vmem:[#allocation2 + $0x2b8] sm:$0xff] }
 0x217   :  { %v1196_v32 = vpop.f32.mrf.mxu1 }
 0x219   :  { %v1197_v33 = vpop.f32.mrf.mxu1 }
 0x21a   :  { %v1198_v34 = vadd.f32 %v1197_v33, %v1196_v32  ;;  %v631_v33 = vld [vmem:[#allocation2 + $0x3d8] sm:$0xff] }
 0x21b   :  { %v1199_v36 = vpop.f32.mrf.mxu1  ;;  %v1476_v37 = vpop.f32.mrf.mxu0 }
 0x21c   :  { %v357_v39 = vadd.f32 %v1198_v34, %v1885_v35  ;;  %v579_v34 = vld [vmem:[#allocation2 + $0x238] sm:$0xff] }
 0x21d   :  { %v1200_v38 = vpop.f32.mrf.mxu1  ;;  %v461_v41 = vpop.f32.mrf.mxu0 }
 0x21e   :  { %v1201_v40 = vadd.f32 %v1200_v38, %v1199_v36  ;;  %v462_v44 = vadd.f32 %v461_v41, %v357_v39  ;;  %v594_v38 = vld [vmem:[#allocation2 + $0x2b0] sm:$0xff] }
 0x21f   :  { %v1202_v42 = vpop.f32.mrf.mxu1  ;;  %v1479_v47 = vpop.f32.mrf.mxu0  ;;  %v578_v41 = vld [vmem:[#allocation2 + $0x230] sm:$0xff] }
 0x220   :  { %v362_v43 = vadd.f32 %v1201_v40, %v1885_v35  ;;  %v500_v51 = vmax.f32 %v462_v44, 0.0  ;;  %v630_v40 = vld [vmem:[#allocation2 + $0x3d0] sm:$0xff]  ;;  %v629_v44 = vld [vmem:[#allocation2 + $0x3c8] sm:$0xff] }
 0x221   :  { %v1203_v45 = vpop.f32.mrf.mxu1  ;;  %v471_v56 = vpop.f32.mrf.mxu0 }
 0x222   :  { %v1204_v46 = vadd.f32 %v1203_v45, %v1202_v42  ;;  %v467_v48 = vadd.f32 %v1476_v37, %v362_v43  ;;  %v615_v37 = vld [vmem:[#allocation2 + $0x358] sm:$0xff]  ;;  %v614_v42 = vld [vmem:[#allocation2 + $0x350] sm:$0xff]  ;;  %v593_v43 = vld [vmem:[#allocation2 + $0x2a8] sm:$0xff] }
 0x223   :  { %v1205_v49 = vpop.f32.mrf.mxu1  ;;  %v577_v45 = vld [vmem:[#allocation2 + $0x228] sm:$0xff] }
 0x224   :  { %v501_v50 = vmax.f32 %v467_v48, 0.0  ;;  %v367_v53 = vadd.f32 %v1204_v46, %v1885_v35  ;;  %v613_v48 = vld [vmem:[#allocation2 + $0x348] sm:$0xff] }
 0x225   :  { %v1206_v52 = vpop.f32.mrf.mxu1 }
 0x226   :  { %v1207_v55 = vadd.f32 %v1206_v52, %v1205_v49  ;;  %707 = vmatprep.mubr.f32.mxu1 %v501_v50  ;;  %v472_v62 = vadd.f32 %v471_v56, %v367_v53  ;;  %v592_v49 = vld [vmem:[#allocation2 + $0x2a0] sm:$0xff]  ;;  %v627_v56 = vld [vmem:[#allocation2 + $0x3b8] sm:$0xff] }
 0x227   :  { %v1890_v58 = vpop.f32.mrf.mxu1  ;;  %708 = vmatmul.mubr.f32.vlgmr.msra.gmra.mxu1 %v500_v51  ;;  %v1482_v21 = vpop.f32.mrf.mxu0  ;;  %v628_v51 = vld [vmem:[#allocation2 + $0x3c0] sm:$0xff] }
 0x228   :  { %v372_v60 = vadd.f32 %v1207_v55, %v1885_v35  ;;  %1315 = vmatpush3.msra.mxu1 %v587_v54  ;;  %v502_v7 = vmax.f32 %v472_v62, 0.0  ;;  %v576_v52 = vld [vmem:[#allocation2 + $0x220] sm:$0xff]  ;;  %v591_v54 = vld [vmem:[#allocation2 + $0x298] sm:$0xff]  ;;  %v626_v62 = vld [vmem:[#allocation2 + $0x3b0] sm:$0xff] }
 0x229   :  { %1316 = vmatprep.subr.mxu1 %v602_v57  ;;  %v1893_v63 = vpop.f32.mrf.mxu1  ;;  %v481_v50 = vpop.f32.mrf.mxu0  ;;  %v612_v53 = vld [vmem:[#allocation2 + $0x340] sm:$0xff]  ;;  %v575_v57 = vld [vmem:[#allocation2 + $0x218] sm:$0xff] }
 0x22a   :  { %1317 = vmatpush3.msra.mxu1 %v586_v59  ;;  %v477_v2 = vadd.f32 %v1479_v47, %v372_v60  ;;  %v1210_v46 = vadd.f32 %v1893_v63, %v1890_v58  ;;  %v611_v59 = vld [vmem:[#allocation2 + $0x338] sm:$0xff]  ;;  %v590_v60 = vld [vmem:[#allocation2 + $0x290] sm:$0xff] }
 0x22b   :  { %1318 = vmatprep.subr.mxu1 %v601_v61  ;;  %v1211_v3 = vpop.f32.mrf.mxu1  ;;  %v1485_v55 = vpop.f32.mrf.mxu0  ;;  %v574_v63 = vld [vmem:[#allocation2 + $0x210] sm:$0xff] }
 0x22c   :  { %1319 = vmatpush3.msra.mxu1 %v585_v0  ;;  %v503_v5 = vmax.f32 %v477_v2, 0.0  ;;  %v377_v58 = vadd.f32 %v1210_v46, %v1885_v35  ;;  %v610_v0 = vld [vmem:[#allocation2 + $0x330] sm:$0xff]  ;;  %v625_v2 = vld [vmem:[#allocation2 + $0x3a8] sm:$0xff]  ;;  %v1029_v46 = vld [vmem:[#allocation4 + $0x58] sm:$0xff] }
 0x22d   :  { %1320 = vmatprep.subr.mxu1 %v600_v1  ;;  %v1212_v8 = vpop.f32.mrf.mxu1  ;;  %v589_v1 = vld [vmem:[#allocation2 + $0x288] sm:$0xff] }
 0x22e   :  { %v1213_v11 = vadd.f32 %v1212_v8, %v1211_v3  ;;  %1321 = vmatpush3.msra.mxu1 %v584_v4  ;;  %777 = vmatprep.mubr.f32.mxu0 %v503_v5  ;;  %v573_v3 = vld [vmem:[#allocation2 + $0x208] sm:$0xff]  ;;  %v482_v4 = vadd.f32 %v481_v50, %v377_v58  ;;  %v1025_v50 = vld [vmem:[#allocation4 + $0x38] sm:$0xff] }
 0x22f   :  { %1322 = vmatprep.subr.mxu1 %v599_v6  ;;  %v1895_v14 = vpop.f32.mrf.mxu1  ;;  %778 = vmatmul.mubr.f32.vlgmr.msra.gmra.mxu0 %v502_v7  ;;  %v609_v6 = vld [vmem:[#allocation2 + $0x328] sm:$0xff]  ;;  %v588_v7 = vld [vmem:[#allocation2 + $0x280] sm:$0xff] }
 0x230   :  { %v382_v17 = vadd.f32 %v1213_v11, %v1885_v35  ;;  %1323 = vmatpush3.msra.mxu1 %v583_v9  ;;  %1350 = vmatpush3.msra.mxu0 %v619_v10  ;;  %v624_v9 = vld [vmem:[#allocation2 + $0x3a0] sm:$0xff] }
 0x231   :  { %1324 = vmatprep.subr.mxu1 %v598_v12  ;;  %1351 = vmatprep.subr.mxu0 %v634_v13  ;;  %v1898_v22 = vpop.f32.mrf.mxu1  ;;  %v572_v10 = vld [vmem:[#allocation2 + $0x200] sm:$0xff]  ;;  %v623_v12 = vld [vmem:[#allocation2 + $0x398] sm:$0xff]  ;;  %v504_v13 = vmax.f32 %v482_v4, 0.0 }
 0x232   :  { %1325 = vmatpush3.msra.mxu1 %v582_v15  ;;  %1352 = vmatpush3.msra.mxu0 %v618_v16  ;;  %v487_v27 = vadd.f32 %v1482_v21, %v382_v17  ;;  %v1216_v5 = vadd.f32 %v1898_v22, %v1895_v14  ;;  %v608_v11 = vld [vmem:[#allocation2 + $0x320] sm:$0xff]  ;;  %v607_v14 = vld [vmem:[#allocation2 + $0x318] sm:$0xff]  ;;  %v491_v16 = vpop.f32.mrf.mxu0  ;;  %v622_v17 = vld [vmem:[#allocation2 + $0x390] sm:$0xff] }
 0x233   :  { %1326 = vmatprep.subr.mxu1 %v597_v19  ;;  %1353 = vmatprep.subr.mxu0 %v633_v20  ;;  %v1217_v30 = vpop.f32.mrf.mxu1  ;;  %v606_v19 = vld [vmem:[#allocation2 + $0x310] sm:$0xff]  ;;  %v621_v20 = vld [vmem:[#allocation2 + $0x388] sm:$0xff] }
 0x234   :  { %1327 = vmatpush3.msra.mxu1 %v581_v23  ;;  %1354 = vmatpush3.msra.mxu0 %v617_v24  ;;  %v505_v32 = vmax.f32 %v487_v27, 0.0  ;;  %v387_v15 = vadd.f32 %v1216_v5, %v1885_v35  ;;  %v605_v22 = vld [vmem:[#allocation2 + $0x308] sm:$0xff]  ;;  %v620_v23 = vld [vmem:[#allocation2 + $0x380] sm:$0xff] }
 0x235   :  { %1328 = vmatprep.subr.mxu1 %v596_v25  ;;  %1355 = vmatprep.subr.mxu0 %v632_v26  ;;  %v1218_v36 = vpop.f32.mrf.mxu1  ;;  %v939_v25 = vld [vmem:[%s2011_s7 + $0x78] sm:$0xff]  ;;  %v938_v26 = vld [vmem:[%s2011_s7 + $0x70] sm:$0xff]  ;;  %v937_v27 = vld [vmem:[%s2011_s7 + $0x68] sm:$0xff] }
 0x236   :  { %1329 = vmatpush3.msra.mxu1 %v580_v28  ;;  %1356 = vmatpush3.msra.mxu0 %v616_v29  ;;  %v1219_v39 = vadd.f32 %v1218_v36, %v1217_v30  ;;  %v492_v21 = vadd.f32 %v491_v16, %v387_v15  ;;  %v936_v28 = vld [vmem:[%s2011_s7 + $0x60] sm:$0xff]  ;;  %v935_v29 = vld [vmem:[%s2011_s7 + $0x58] sm:$0xff]  ;;  %v934_v30 = vld [vmem:[%s2011_s7 + $0x50] sm:$0xff] }
 0x237   :  { %1330 = vmatprep.subr.mxu1 %v595_v31  ;;  %847 = vmatprep.mubr.f32.mxu1 %v505_v32  ;;  %v933_v31 = vld [vmem:[%s2011_s7 + $0x48] sm:$0xff]  ;;  %v932_v32 = vld [vmem:[%s2011_s7 + $0x40] sm:$0xff] }
 0x238   :  { %1357 = vmatprep.subr.mxu0 %v631_v33  ;;  %1331 = vmatpush3.msra.mxu1 %v579_v34  ;;  %v392_v47 = vadd.f32 %v1219_v39, %v1885_v35  ;;  %v604_v35 = vld [vmem:[#allocation2 + $0x300] sm:$0xff]  ;;  %v506_v24 = vmax.f32 %v492_v21, 0.0  ;;  %v931_v33 = vld [vmem:[%s2011_s7 + $0x38] sm:$0xff]  ;;  %v930_v34 = vld [vmem:[%s2011_s7 + $0x30] sm:$0xff] }
 0x239   :  { %1358 = vmatpush3.msra.mxu0 %v615_v37  ;;  %1332 = vmatprep.subr.mxu1 %v594_v38  ;;  %v929_v36 = vld [vmem:[%s2011_s7 + $0x28] sm:$0xff]  ;;  %v928_v37 = vld [vmem:[%s2011_s7 + $0x20] sm:$0xff]  ;;  %v927_v38 = vld [vmem:[%s2011_s7 + $0x18] sm:$0xff] }
 0x23a   :  { %1359 = vmatprep.subr.mxu0 %v630_v40  ;;  %1333 = vmatpush3.msra.mxu1 %v578_v41  ;;  %v497_v61 = vadd.f32 %v1485_v55, %v392_v47  ;;  %v926_v39 = vld [vmem:[%s2011_s7 + $0x10] sm:$0xff]  ;;  %v925_v40 = vld [vmem:[%s2011_s7 + $0x8] sm:$0xff]  ;;  %v924_v41 = vld [vmem:[%s2011_s7] sm:$0xff] }
 0x23b   :  { %1360 = vmatpush3.msra.mxu0 %v614_v42  ;;  %1334 = vmatprep.subr.mxu1 %v593_v43  ;;  %v1033_v42 = vld [vmem:[#allocation4 + $0x78] sm:$0xff]  ;;  %v1032_v43 = vld [vmem:[#allocation4 + $0x70] sm:$0xff] }
 0x23c   :  { %1361 = vmatprep.subr.mxu0 %v629_v44  ;;  %1335 = vmatpush3.msra.mxu1 %v577_v45  ;;  %v507_v8 = vmax.f32 %v497_v61, 0.0  ;;  %v1031_v44 = vld [vmem:[#allocation4 + $0x68] sm:$0xff]  ;;  %v1030_v45 = vld [vmem:[#allocation4 + $0x60] sm:$0xff]  ;;  %v1028_v47 = vld [vmem:[#allocation4 + $0x50] sm:$0xff] }
 0x23d   :  { %1362 = vmatpush3.msra.mxu0 %v613_v48  ;;  %1336 = vmatprep.subr.mxu1 %v592_v49  ;;  %v1027_v48 = vld [vmem:[#allocation4 + $0x48] sm:$0xff]  ;;  %v1026_v49 = vld [vmem:[#allocation4 + $0x40] sm:$0xff] }
 0x23e   :  { %1363 = vmatprep.subr.mxu0 %v628_v51  ;;  %1337 = vmatpush3.msra.mxu1 %v576_v52  ;;  %v1024_v51 = vld [vmem:[#allocation4 + $0x30] sm:$0xff]  ;;  %v1023_v52 = vld [vmem:[#allocation4 + $0x28] sm:$0xff]  ;;  %v1147_v61 = vld [vmem:[%s2010_s6] ss:$0 sm:$0xff] }
 0x23f   :  { %1364 = vmatpush3.msra.mxu0 %v612_v53  ;;  %1338 = vmatprep.subr.mxu1 %v591_v54  ;;  %v1022_v53 = vld [vmem:[#allocation4 + $0x20] sm:$0xff]  ;;  %v1021_v54 = vld [vmem:[#allocation4 + $0x18] sm:$0xff] }
 0x240   :  { %1365 = vmatprep.subr.mxu0 %v627_v56  ;;  %1339 = vmatpush3.msra.mxu1 %v575_v57 }
 0x241   :  { %1366 = vmatpush3.msra.mxu0 %v611_v59  ;;  %1340 = vmatprep.subr.mxu1 %v590_v60 }
 0x242   :  { %1367 = vmatprep.subr.mxu0 %v626_v62  ;;  %1341 = vmatpush3.msra.mxu1 %v574_v63 }
 0x243   :  { %1368 = vmatpush3.msra.mxu0 %v610_v0  ;;  %1342 = vmatprep.subr.mxu1 %v589_v1 }
 0x244   :  { %1369 = vmatprep.subr.mxu0 %v625_v2  ;;  %1343 = vmatpush3.msra.mxu1 %v573_v3 }
 0x245   :  { %1370 = vmatpush3.msra.mxu0 %v609_v6  ;;  %1344 = vmatprep.subr.mxu1 %v588_v7 }
 0x246   :  { %1371 = vmatprep.subr.mxu0 %v624_v9  ;;  %917 = vmatprep.mubr.f32.mxu0 %v507_v8  ;;  %v1020_v9 = vld [vmem:[#allocation4 + $0x10] sm:$0xff] }
 0x247   :  { %1345 = vmatpush3.msra.mxu1 %v572_v10  ;;  %1372 = vmatpush3.msra.mxu0 %v608_v11  ;;  %v1019_v10 = vld [vmem:[#allocation4 + $0x8] sm:$0xff]  ;;  %v1018_v11 = vld [vmem:[#allocation4] sm:$0xff] }
 0x248   :  { %848 = vmatmul.mubr.f32.vlgmr.msra.gmra.mxu1 %v504_v13  ;;  %1373 = vmatprep.subr.mxu0 %v623_v12  ;;  %v1148_v12 = vld [vmem:[%s2012_s8] ss:$0 sm:$0xff] }
 0x249   :  { %1374 = vmatpush3.msra.mxu0 %v607_v14  ;;  %1486 = vmatprep.subr.mxu1 %v1632_v18 }
 0x24a   :  { %1375 = vmatprep.subr.mxu0 %v622_v17  ;;  %1487 = vmatpush3.msra.mxu1 %v939_v25  ;;  %v1149_v17 = vld [vmem:[%s2014_s10] ss:$0 sm:$0xff] }
 0x24b   :  { %1376 = vmatpush3.msra.mxu0 %v606_v19  ;;  %1488 = vmatprep.subr.mxu1 %v1632_v18 }
 0x24c   :  { %1377 = vmatprep.subr.mxu0 %v621_v20  ;;  %1489 = vmatpush3.msra.mxu1 %v938_v26 }
 0x24d   :  { %1378 = vmatpush3.msra.mxu0 %v605_v22  ;;  %1490 = vmatprep.subr.mxu1 %v1632_v18  ;;  %v1634_v22 = vmov 64  }
 0x24e   :  { %1379 = vmatprep.subr.mxu0 %v620_v23  ;;  %1491 = vmatpush3.msra.mxu1 %v937_v27 }
 0x24f   :  { %1380 = vmatpush3.msra.mxu0 %v604_v35  ;;  %1492 = vmatprep.subr.mxu1 %v1632_v18 }
 0x250   :  { %918 = vmatmul.mubr.f32.vlgmr.msra.gmra.mxu0 %v506_v24  ;;  %1521 = vmatprep.subr.mxu0 %v1632_v18 }
 0x251   :  { %1493 = vmatpush3.msra.mxu1 %v936_v28  ;;  %1518 = vmatprep.mubr.msk.f32.mxu1 %vm1633_vm3, %v1632_v18 }
 0x252   :  { %1494 = vmatprep.subr.mxu1 %v1632_v18  ;;  %1553 = vmatprep.mubr.msk.f32.mxu0 %vm1633_vm3, %v1632_v18 }
 0x253   :  { %1495 = vmatpush3.msra.mxu1 %v935_v29  ;;  %1522 = vmatpush3.msra.mxu0 %v1033_v42 }
 0x254   :  { %1496 = vmatprep.subr.mxu1 %v1632_v18  ;;  %1523 = vmatprep.subr.mxu0 %v1632_v18 }
 0x255   :  { %1497 = vmatpush3.msra.mxu1 %v934_v30  ;;  %1524 = vmatpush3.msra.mxu0 %v1032_v43 }
 0x256   :  { %1498 = vmatprep.subr.mxu1 %v1632_v18  ;;  %1525 = vmatprep.subr.mxu0 %v1632_v18 }
 0x257   :  { %1499 = vmatpush3.msra.mxu1 %v933_v31  ;;  %1526 = vmatpush3.msra.mxu0 %v1031_v44 }
 0x258   :  { %1500 = vmatprep.subr.mxu1 %v1632_v18  ;;  %1527 = vmatprep.subr.mxu0 %v1632_v18 }
 0x259   :  { %1501 = vmatpush3.msra.mxu1 %v932_v32  ;;  %1528 = vmatpush3.msra.mxu0 %v1030_v45 }
 0x25a   :  { %1502 = vmatprep.subr.mxu1 %v1632_v18  ;;  %1529 = vmatprep.subr.mxu0 %v1632_v18 }
 0x25b   :  { %1503 = vmatpush3.msra.mxu1 %v931_v33  ;;  %1530 = vmatpush3.msra.mxu0 %v1029_v46 }
 0x25c   :  { %1504 = vmatprep.subr.mxu1 %v1632_v18  ;;  %1531 = vmatprep.subr.mxu0 %v1632_v18 }
 0x25d   :  { %1505 = vmatpush3.msra.mxu1 %v930_v34  ;;  %1532 = vmatpush3.msra.mxu0 %v1028_v47 }
 0x25e   :  { %1506 = vmatprep.subr.mxu1 %v1632_v18  ;;  %1533 = vmatprep.subr.mxu0 %v1632_v18 }
 0x25f   :  { %1507 = vmatpush3.msra.mxu1 %v929_v36  ;;  %1534 = vmatpush3.msra.mxu0 %v1027_v48 }
 0x260   :  { %1508 = vmatprep.subr.mxu1 %v1632_v18  ;;  %1535 = vmatprep.subr.mxu0 %v1632_v18 }
 0x261   :  { %1509 = vmatpush3.msra.mxu1 %v928_v37  ;;  %1536 = vmatpush3.msra.mxu0 %v1026_v49 }
 0x262   :  { %1510 = vmatprep.subr.mxu1 %v1632_v18  ;;  %1537 = vmatprep.subr.mxu0 %v1632_v18 }
 0x263   :  { %1511 = vmatpush3.msra.mxu1 %v927_v38  ;;  %1538 = vmatpush3.msra.mxu0 %v1025_v50 }
 0x264   :  { %1512 = vmatprep.subr.mxu1 %v1632_v18  ;;  %1539 = vmatprep.subr.mxu0 %v1632_v18 }
 0x265   :  { %1513 = vmatpush3.msra.mxu1 %v926_v39  ;;  %1540 = vmatpush3.msra.mxu0 %v1024_v51 }
 0x266   :  { %1514 = vmatprep.subr.mxu1 %v1632_v18  ;;  %1541 = vmatprep.subr.mxu0 %v1632_v18 }
 0x267   :  { %1515 = vmatpush3.msra.mxu1 %v925_v40  ;;  %1542 = vmatpush3.msra.mxu0 %v1023_v52 }
 0x268   :  { %1516 = vmatprep.subr.mxu1 %v1632_v18  ;;  %1543 = vmatprep.subr.mxu0 %v1632_v18 }
 0x269   :  { %1517 = vmatpush3.msra.mxu1 %v924_v41  ;;  %1544 = vmatpush3.msra.mxu0 %v1022_v53 }
 0x26a   :  { %1545 = vmatprep.subr.mxu0 %v1632_v18  ;;  %1570 = vset.pattern.permute.xlu0 %v1634_v22 }
 0x26b   :  { %1546 = vmatpush3.msra.mxu0 %v1021_v54 }
 0x26c   :  { %1547 = vmatprep.subr.mxu0 %v1632_v18 }
 0x26d   :  { %1548 = vmatpush3.msra.mxu0 %v1020_v9 }
 0x26e   :  { %1549 = vmatprep.subr.mxu0 %v1632_v18 }
 0x26f   :  { %1550 = vmatpush3.msra.mxu0 %v1019_v10 }
 0x270   :  { %1551 = vmatprep.subr.mxu0 %v1632_v18 }
 0x271   :  { %1552 = vmatpush3.msra.mxu0 %v1018_v11 }
 0x2e7   :  { %v1276_v55 = vpop.f32.mrf.mxu1 }
 0x2e9   :  { %v1277_v56 = vpop.f32.mrf.mxu1 }
 0x2ea   :  { %v1278_v60 = vadd.f32 %v1277_v56, %v1276_v55 }
 0x2ec   :  { %v710_v0 = vadd.f32 %v1278_v60, %v1147_v61 }
 0x2ef   :  { %v1311_v57 = vpop.f32.mrf.mxu0 }
 0x2f1   :  { %v1312_v59 = vpop.f32.mrf.mxu0 }
 0x2f2   :  { %v1313_v63 = vadd.f32 %v1312_v59, %v1311_v57 }
 0x2f4   :  { %v780_v3 = vadd.f32 %v1313_v63, %v710_v0 }
 0x308   :  { %v1346_v58 = vpop.f32.mrf.mxu1 }
 0x30a   :  { %v1347_v62 = vpop.f32.mrf.mxu1 }
 0x30b   :  { %v1348_v1 = vadd.f32 %v1347_v62, %v1346_v58 }
 0x30d   :  { %v850_v5 = vadd.f32 %v1348_v1, %v780_v3 }
 0x310   :  { %v1381_v2 = vpop.f32.mrf.mxu0 }
 0x312   :  { %v1382_v4 = vpop.f32.mrf.mxu0 }
 0x313   :  { %v1383_v6 = vadd.f32 %v1382_v4, %v1381_v2 }
 0x315   :  { %v920_v7 = vadd.f32 %v1383_v6, %v850_v5 }
 0x317   :  { %v923_v8 = vmax.f32 %v920_v7, 0.0 }
 0x319   :  { %1519 = vmatmul.mubr.f32.vlgmr.msra.gmra.mxu1 %v923_v8 }
 0x3d9   :  { %v1013_v13 = vpop.f32.mrf.mxu1 }
 0x3da   :  { %v1014_v15 = vadd.f32 %v1148_v12, %v1013_v13 }
 0x3db   :  { %v1520_v14 = vpop.f32.mrf.mxu1 }
 0x3dc   :  { %v1017_v16 = vmax.f32 %v1014_v15, 0.0 }
 0x3de   :  { %1554 = vmatmul.mubr.f32.vlgmr.msra.gmra.mxu0 %v1017_v16 }
 0x49e   :  { %v1107_v19 = vpop.f32.mrf.mxu0 }
 0x49f   :  { %v1108_v20 = vadd.f32 %v1149_v17, %v1107_v19 }
 0x4a0   :  { %v1555_v21 = vpop.f32.mrf.mxu0 }
 0x4a1   :  { %v1112_v18 = vsel %vm1111_vm4, %v1108_v20, -inf }
 0x4a2   :  { %1113 = vmax.xlane.f32.xlu1 %v1112_v18 }
 0x52b   :  { %v1114_v23 = vpop.xlane.xlu1 %1113 }
 0x52c   :  { %v1115_v35 = vsub.f32 %v1108_v20, %v1114_v23 }
 0x52e   :  { %v1116_v24 = vmul.f32 1.442695, %v1115_v35 }
 0x530   :  { %1571 = vpow2.f32 %v1116_v24 }
 0x531   :  { %1573 = vtanh.f32 %v1108_v20 }
 0x53d   :  { %v1572_v25 = vpop.eup %1571 }
 0x53e   :  { %v1118_v26 = vsel %vm1111_vm4, %v1572_v25, 0.0  ;;  %v1574_v27 = vpop.eup %1573 }
 0x53f   :  { %1119 = vadd.xlane.f32.xlu0 %v1118_v26 }
 0x555   :  { %1126 = vperm.xlu0 %1570, %v1574_v27  }
 0x5c8   :  { %v1120_v28 = vpop.xlane.xlu0 %1119 }
 0x5c9   :  { %1575 = vrcp.f32 %v1120_v28 }
 0x5d0   :  { %v1127_v31 = vpop.permute.xlu0 %1126 }
 0x5d6   :  { %v1576_v29 = vpop.eup %1575 }
 0x5d7   :  { %v1122_v30 = vmul.f32 %v1576_v29, %v1572_v25 }
 0x5d9   :  { %v1129_v32 = vsel %vm1111_vm4, %v1122_v30, %v1127_v31 }
 0x5da   :  { %1130 = vst [vmem:[%s2015_s11] sm:$0xff] %v1129_v32 }
 0x5db   :  { %1135 = vsyncpa [#allocation3], 1 }
 0x5dc   :  { %1136 = vsyncpa [#allocation5], 1 }

</bundles_post_ra>
